<compile_context>
chip_gen: v7x
topology: tpu7x:2x2x1
jax: 0.10.0
libtpu: 0.0.40
codegen_flags: <defaults>
</compile_context>

<pallas_src>
import functools

import jax
import jax.numpy as jnp
from jax import lax
from jax.experimental import pallas as pl
from jax.experimental.pallas import tpu as pltpu


def _residual_kernel(x_ref, w1_ref, b1_ref, w2_ref, b2_ref, out_ref, *, W):
    # x_ref  : (1, C_in, H*W)      -- one batch element, channel-major
    # w1_ref : (C_hid, 9*C_in)     -- 3x3 conv weights, im2col-ready
    # b1_ref : (C_hid, 1)
    # w2_ref : (C_out, C_hid)      -- 1x1 conv weights (transposed)
    # b2_ref : (C_out, 1)
    # out_ref: (1, C_out, H*W)
    _, C_in, HW = x_ref.shape

    x = x_ref[0]                       # (C_in, HW), f32
    xr = jnp.maximum(x, 0.0)           # first ReLU

    # Zero-extend the flattened spatial axis by (W+1) on each side: every 3x3
    # tap becomes a static, in-bounds lane slice, and out-of-image ROWS read
    # zeros automatically (matches padding=1 applied after the ReLU).
    zpad = jnp.zeros((C_in, W + 1), dtype=xr.dtype)
    xr_ext = jnp.concatenate([zpad, xr, zpad], axis=1)   # (C_in, HW + 2W + 2)

    # Column-border masks (only the x-direction needs explicit masking).
    col_x = lax.broadcasted_iota(jnp.int32, (C_in, HW), 1) % W
    not_left = col_x > 0          # tap dx = -1 invalid at x == 0
    not_right = col_x < W - 1     # tap dx = +1 invalid at x == W-1

    # im2col: 9 shifted views stacked to (9*C_in, HW); one fused MXU matmul.
    taps = []
    for dy in (-1, 0, 1):
        for dx in (-1, 0, 1):
            start = (W + 1) + dy * W + dx
            t = xr_ext[:, start:start + HW]            # static lane slice
            if dx == -1:
                t = jnp.where(not_left, t, 0.0)
            elif dx == 1:
                t = jnp.where(not_right, t, 0.0)
            taps.append(t)
    col = jnp.concatenate(taps, axis=0)                # (9*C_in, HW)

    h = jnp.dot(w1_ref[...], col, preferred_element_type=jnp.float32)
    h = jnp.maximum(h + b1_ref[...], 0.0)              # bias + second ReLU
    y = jnp.dot(w2_ref[...], h, preferred_element_type=jnp.float32) + b2_ref[...]

    # Residual add with the original (pre-ReLU) input; lane-dense store.
    out_ref[...] = (x + y)[None].astype(out_ref.dtype)


def residual_layer(x_nchw, w1_hwio, b1, w2_io, b2):
    """x_nchw: (N, C_in, H, W) -> (N, C_out, H, W); requires C_out == C_in."""
    N, C_in, H, W = x_nchw.shape
    C_hid = w1_hwio.shape[-1]
    C_out = w2_io.shape[-1]
    assert C_out == C_in, "residual add requires C_out == C_in"
    HW = H * W

    # Free reshape: NCHW is already channel-major / spatial-minor.
    x_flat = x_nchw.reshape(N, C_in, HW)

    # (3,3,C_in,C_hid) -> (C_hid, 9*C_in), tap-major to match im2col row order.
    w1_mat = jnp.transpose(w1_hwio.reshape(9, C_in, C_hid), (2, 0, 1)).reshape(
        C_hid, 9 * C_in)
    w2_t = w2_io.T                     # (C_out, C_hid)
    b1c = b1.reshape(C_hid, 1)
    b2c = b2.reshape(C_out, 1)

    out_flat = pl.pallas_call(
        functools.partial(_residual_kernel, W=W),
        out_shape=jax.ShapeDtypeStruct((N, C_out, HW), x_nchw.dtype),
        grid=(N,),
        in_specs=[
            pl.BlockSpec((1, C_in, HW), lambda n: (n, 0, 0)),
            pl.BlockSpec((C_hid, 9 * C_in), lambda n: (0, 0)),
            pl.BlockSpec((C_hid, 1), lambda n: (0, 0)),
            pl.BlockSpec((C_out, C_hid), lambda n: (0, 0)),
            pl.BlockSpec((C_out, 1), lambda n: (0, 0)),
        ],
        out_specs=pl.BlockSpec((1, C_out, HW), lambda n: (n, 0, 0)),
        compiler_params=pltpu.CompilerParams(
            dimension_semantics=("parallel",)),
    )(x_flat, w1_mat, b1c, w2_t, b2c)

    return out_flat.reshape(N, C_out, H, W)


def _reference(x_nchw, w1_hwio, b1, w2_io, b2):
    """Pure-JAX reference matching the PyTorch module semantics."""
    x = jnp.transpose(x_nchw, (0, 2, 3, 1))                  # NHWC
    h = jnp.maximum(x, 0.0)
    h = lax.conv_general_dilated(
        h, w1_hwio, window_strides=(1, 1), padding="SAME",
        dimension_numbers=("NHWC", "HWIO", "NHWC")) + b1
    h = jnp.maximum(h, 0.0)
    h = lax.conv_general_dilated(
        h, w2_io[None, None], window_strides=(1, 1), padding="VALID",
        dimension_numbers=("NHWC", "HWIO", "NHWC")) + b2
    out = x + h
    return jnp.transpose(out, (0, 3, 1, 2))


if __name__ == "__main__":
    # Small shapes consistent with the module; residual add requires C_out == C_in.
    N, C_in, C_hid, C_out, H, W = 2, 4, 8, 4, 16, 16

    key = jax.random.PRNGKey(0)
    kx, k1, kb1, k2, kb2 = jax.random.split(key, 5)

    x = jax.random.normal(kx, (N, C_in, H, W), jnp.float32)
    # Synthetic params (PyTorch shapes (C_hid,C_in,3,3)/(C_out,C_hid,1,1) -> HWIO / IO)
    w1_hwio = jax.random.normal(k1, (3, 3, C_in, C_hid), jnp.float32) * 0.1
    b1 = jax.random.normal(kb1, (C_hid,), jnp.float32) * 0.1
    w2_io = jax.random.normal(k2, (C_hid, C_out), jnp.float32) * 0.1
    b2 = jax.random.normal(kb2, (C_out,), jnp.float32) * 0.1

    out = jax.jit(residual_layer)(x, w1_hwio, b1, w2_io, b2)
    out = jax.block_until_ready(out)

    ref = _reference(x, w1_hwio, b1, w2_io, b2)
    assert out.shape == (N, C_out, H, W)
    assert jnp.allclose(out, ref, atol=1e-5, rtol=1e-5), "mismatch vs reference"

    print("KERNEL_OK")
</pallas_src>

<mosaic_0001>
module attributes {stable_mosaic.version = 11 : i64} {
  func.func @_residual_kernel(%arg0: i32, %arg1: memref<1x4x256xf32, #tpu.memory_space<vmem>>, %arg2: memref<8x36xf32, #tpu.memory_space<vmem>>, %arg3: memref<8x1xf32, #tpu.memory_space<vmem>>, %arg4: memref<4x8xf32, #tpu.memory_space<vmem>>, %arg5: memref<4x1xf32, #tpu.memory_space<vmem>>, %arg6: memref<1x4x256xf32, #tpu.memory_space<vmem>>) attributes {dimension_semantics = [#tpu.dimension_semantics<parallel>], iteration_bounds = array<i64: 2>, scalar_prefetch = 0 : i64, scratch_operands = 0 : i64, tpu.core_type = #tpu.core_type<tc>, window_params = [{transform_indices = @transform_0, window_bounds = array<i64: 1, 4, 256>}, {pipeline_mode = #tpu.pipeline_mode<synchronous>, transform_indices = @transform_1, window_bounds = array<i64: 8, 36>}, {pipeline_mode = #tpu.pipeline_mode<synchronous>, transform_indices = @transform_2, window_bounds = array<i64: 8, 1>}, {pipeline_mode = #tpu.pipeline_mode<synchronous>, transform_indices = @transform_3, window_bounds = array<i64: 4, 8>}, {pipeline_mode = #tpu.pipeline_mode<synchronous>, transform_indices = @transform_4, window_bounds = array<i64: 4, 1>}, {transform_indices = @transform_5, window_bounds = array<i64: 1, 4, 256>}]} {
    %c0 = arith.constant 0 : index
    %c0_0 = arith.constant 0 : index
    %c0_1 = arith.constant 0 : index
    %0 = vector.load %arg1[%c0, %c0_0, %c0_1] : memref<1x4x256xf32, #tpu.memory_space<vmem>>, vector<1x4x256xf32>
    %1 = vector.shape_cast %0 : vector<1x4x256xf32> to vector<4x256xf32>
    %cst = arith.constant 0.000000e+00 : f32
    %2 = vector.broadcast %cst : f32 to vector<4x256xf32>
    %3 = arith.maximumf %1, %2 : vector<4x256xf32>
    %cst_2 = arith.constant 0.000000e+00 : f32
    %4 = vector.broadcast %cst_2 : f32 to vector<4x17xf32>
    %5 = tpu.concatenate %4, %3, %4 in 1 : vector<4x17xf32>, vector<4x256xf32>, vector<4x17xf32> -> vector<4x290xf32>
    %6 = tpu.iota {dimensions = array<i32: 1>} : vector<4x256xi32>
    %c16_i32 = arith.constant 16 : i32
    %c0_i32 = arith.constant 0 : i32
    %7 = arith.cmpi eq, %c16_i32, %c0_i32 : i32
    %c1_i32 = arith.constant 1 : i32
    %8 = arith.select %7, %c1_i32, %c16_i32 : i32
    %9 = vector.broadcast %8 : i32 to vector<4x256xi32>
    %10 = arith.remsi %6, %9 : vector<4x256xi32>
    %c0_i32_3 = arith.constant 0 : i32
    %11 = vector.broadcast %c0_i32_3 : i32 to vector<4x256xi32>
    %12 = arith.cmpi ne, %10, %11 : vector<4x256xi32>
    %c0_i32_4 = arith.constant 0 : i32
    %13 = vector.broadcast %c0_i32_4 : i32 to vector<4x256xi32>
    %14 = arith.cmpi slt, %10, %13 : vector<4x256xi32>
    %c0_i32_5 = arith.constant 0 : i32
    %15 = arith.cmpi slt, %8, %c0_i32_5 : i32
    %16 = vector.broadcast %15 : i1 to vector<4x256xi1>
    %17 = vector.broadcast %16 : vector<4x256xi1> to vector<4x256xi1>
    %18 = arith.xori %14, %17 : vector<4x256xi1>
    %19 = arith.andi %18, %12 : vector<4x256xi1>
    %20 = vector.broadcast %8 : i32 to vector<4x256xi32>
    %21 = arith.addi %10, %20 : vector<4x256xi32>
    %22 = arith.select %19, %21, %10 : vector<4x256xi1>, vector<4x256xi32>
    %c0_i32_6 = arith.constant 0 : i32
    %23 = vector.broadcast %c0_i32_6 : i32 to vector<4x256xi32>
    %24 = arith.cmpi sgt, %22, %23 : vector<4x256xi32>
    %c15_i32 = arith.constant 15 : i32
    %25 = vector.broadcast %c15_i32 : i32 to vector<4x256xi32>
    %26 = arith.cmpi slt, %22, %25 : vector<4x256xi32>
    %27 = vector.extract_strided_slice %5 {offsets = [0, 0], sizes = [4, 256], strides = [1, 1]} : vector<4x290xf32> to vector<4x256xf32>
    %cst_7 = arith.constant 0.000000e+00 : f32
    %28 = vector.broadcast %cst_7 : f32 to vector<4x256xf32>
    %29 = arith.select %24, %27, %28 : vector<4x256xi1>, vector<4x256xf32>
    %30 = vector.extract_strided_slice %5 {offsets = [0, 1], sizes = [4, 256], strides = [1, 1]} : vector<4x290xf32> to vector<4x256xf32>
    %31 = vector.extract_strided_slice %5 {offsets = [0, 2], sizes = [4, 256], strides = [1, 1]} : vector<4x290xf32> to vector<4x256xf32>
    %cst_8 = arith.constant 0.000000e+00 : f32
    %32 = vector.broadcast %cst_8 : f32 to vector<4x256xf32>
    %33 = arith.select %26, %31, %32 : vector<4x256xi1>, vector<4x256xf32>
    %34 = vector.extract_strided_slice %5 {offsets = [0, 16], sizes = [4, 256], strides = [1, 1]} : vector<4x290xf32> to vector<4x256xf32>
    %cst_9 = arith.constant 0.000000e+00 : f32
    %35 = vector.broadcast %cst_9 : f32 to vector<4x256xf32>
    %36 = arith.select %24, %34, %35 : vector<4x256xi1>, vector<4x256xf32>
    %37 = vector.extract_strided_slice %5 {offsets = [0, 17], sizes = [4, 256], strides = [1, 1]} : vector<4x290xf32> to vector<4x256xf32>
    %38 = vector.extract_strided_slice %5 {offsets = [0, 18], sizes = [4, 256], strides = [1, 1]} : vector<4x290xf32> to vector<4x256xf32>
    %cst_10 = arith.constant 0.000000e+00 : f32
    %39 = vector.broadcast %cst_10 : f32 to vector<4x256xf32>
    %40 = arith.select %26, %38, %39 : vector<4x256xi1>, vector<4x256xf32>
    %41 = vector.extract_strided_slice %5 {offsets = [0, 32], sizes = [4, 256], strides = [1, 1]} : vector<4x290xf32> to vector<4x256xf32>
    %cst_11 = arith.constant 0.000000e+00 : f32
    %42 = vector.broadcast %cst_11 : f32 to vector<4x256xf32>
    %43 = arith.select %24, %41, %42 : vector<4x256xi1>, vector<4x256xf32>
    %44 = vector.extract_strided_slice %5 {offsets = [0, 33], sizes = [4, 256], strides = [1, 1]} : vector<4x290xf32> to vector<4x256xf32>
    %45 = vector.extract_strided_slice %5 {offsets = [0, 34], sizes = [4, 256], strides = [1, 1]} : vector<4x290xf32> to vector<4x256xf32>
    %cst_12 = arith.constant 0.000000e+00 : f32
    %46 = vector.broadcast %cst_12 : f32 to vector<4x256xf32>
    %47 = arith.select %26, %45, %46 : vector<4x256xi1>, vector<4x256xf32>
    %48 = tpu.concatenate %29, %30, %33, %36, %37, %40, %43, %44, %47 in 0 : vector<4x256xf32>, vector<4x256xf32>, vector<4x256xf32>, vector<4x256xf32>, vector<4x256xf32>, vector<4x256xf32>, vector<4x256xf32>, vector<4x256xf32>, vector<4x256xf32> -> vector<36x256xf32>
    %c0_13 = arith.constant 0 : index
    %c0_14 = arith.constant 0 : index
    %49 = vector.load %arg2[%c0_13, %c0_14] : memref<8x36xf32, #tpu.memory_space<vmem>>, vector<8x36xf32>
    %cst_15 = arith.constant dense<0.000000e+00> : vector<8x256xf32>
    %50 = tpu.matmul %49, %48, %cst_15 {dimension_numbers = #tpu.dot_dimension_numbers<[1], [0], [0], [1], [0, 0, 1, 1], [], []>} : vector<8x36xf32>, vector<36x256xf32>, vector<8x256xf32> -> vector<8x256xf32>
    %c0_16 = arith.constant 0 : index
    %c0_17 = arith.constant 0 : index
    %51 = vector.load %arg3[%c0_16, %c0_17] : memref<8x1xf32, #tpu.memory_space<vmem>>, vector<8x1xf32>
    %52 = vector.broadcast %51 : vector<8x1xf32> to vector<8x256xf32>
    %53 = arith.addf %50, %52 : vector<8x256xf32>
    %cst_18 = arith.constant 0.000000e+00 : f32
    %54 = vector.broadcast %cst_18 : f32 to vector<8x256xf32>
    %55 = arith.maximumf %53, %54 : vector<8x256xf32>
    %c0_19 = arith.constant 0 : index
    %c0_20 = arith.constant 0 : index
    %56 = vector.load %arg4[%c0_19, %c0_20] : memref<4x8xf32, #tpu.memory_space<vmem>>, vector<4x8xf32>
    %cst_21 = arith.constant dense<0.000000e+00> : vector<4x256xf32>
    %57 = tpu.matmul %56, %55, %cst_21 {dimension_numbers = #tpu.dot_dimension_numbers<[1], [0], [0], [1], [0, 0, 1, 1], [], []>} : vector<4x8xf32>, vector<8x256xf32>, vector<4x256xf32> -> vector<4x256xf32>
    %c0_22 = arith.constant 0 : index
    %c0_23 = arith.constant 0 : index
    %58 = vector.load %arg5[%c0_22, %c0_23] : memref<4x1xf32, #tpu.memory_space<vmem>>, vector<4x1xf32>
    %59 = vector.broadcast %58 : vector<4x1xf32> to vector<4x256xf32>
    %60 = arith.addf %57, %59 : vector<4x256xf32>
    %61 = arith.addf %1, %60 : vector<4x256xf32>
    %62 = vector.shape_cast %61 : vector<4x256xf32> to vector<1x4x256xf32>
    %c0_24 = arith.constant 0 : index
    %c0_25 = arith.constant 0 : index
    %c0_26 = arith.constant 0 : index
    %63 = vector.load %arg6[%c0_24, %c0_25, %c0_26] : memref<1x4x256xf32, #tpu.memory_space<vmem>>, vector<1x4x256xf32>
    tpu.vector_store %arg6[%c0_24, %c0_25, %c0_26], %62 {strides = array<i32>} : memref<1x4x256xf32, #tpu.memory_space<vmem>>, vector<1x4x256xf32>,
    return
  }
  func.func @transform_0(%arg0: i32) -> (i32, i32, i32) {
    %c0_i32 = arith.constant 0 : i32
    %c0_i32_0 = arith.constant 0 : i32
    %c0_i32_1 = arith.constant 0 : i32
    return %arg0, %c0_i32, %c0_i32_0 : i32, i32, i32
  }
  func.func @transform_1(%arg0: i32) -> (i32, i32) {
    %c0_i32 = arith.constant 0 : i32
    %c0_i32_0 = arith.constant 0 : i32
    %c0_i32_1 = arith.constant 0 : i32
    return %c0_i32, %c0_i32_0 : i32, i32
  }
  func.func @transform_2(%arg0: i32) -> (i32, i32) {
    %c0_i32 = arith.constant 0 : i32
    %c0_i32_0 = arith.constant 0 : i32
    %c0_i32_1 = arith.constant 0 : i32
    return %c0_i32, %c0_i32_0 : i32, i32
  }
  func.func @transform_3(%arg0: i32) -> (i32, i32) {
    %c0_i32 = arith.constant 0 : i32
    %c0_i32_0 = arith.constant 0 : i32
    %c0_i32_1 = arith.constant 0 : i32
    return %c0_i32, %c0_i32_0 : i32, i32
  }
  func.func @transform_4(%arg0: i32) -> (i32, i32) {
    %c0_i32 = arith.constant 0 : i32
    %c0_i32_0 = arith.constant 0 : i32
    %c0_i32_1 = arith.constant 0 : i32
    return %c0_i32, %c0_i32_0 : i32, i32
  }
  func.func @transform_5(%arg0: i32) -> (i32, i32, i32) {
    %c0_i32 = arith.constant 0 : i32
    %c0_i32_0 = arith.constant 0 : i32
    %c0_i32_1 = arith.constant 0 : i32
    return %arg0, %c0_i32, %c0_i32_0 : i32, i32, i32
  }
}

</mosaic_0001>

<bundles_post_ra>
// kernel: residual_layer.1
= control target key start
LH: loop header
LB: loop body
LE: loop exit
PB: predicated region body
PF: predicated region fallthrough
CT: control target
= control target key end

     0   :  { %s760_s18 = smov 0   ;;  %s881_s0 = inlined_call_operand.vmem [shape: f32[2,4,256], index: 0, kind: input, shape index: {}]   ;;  %s882_s1 = inlined_call_operand.vmem [shape: f32[8,36], index: 1, kind: input, shape index: {}]   ;;  %s883_s2 = inlined_call_operand.vmem [shape: f32[8,1], index: 2, kind: input, shape index: {}]   ;;  %s884_s3 = inlined_call_operand.vmem [shape: f32[4,8], index: 3, kind: input, shape index: {}]   ;;  %s885_s4 = inlined_call_operand.vmem [shape: f32[4,1], index: 4, kind: input, shape index: {}]   ;;  %s886_s5 = inlined_call_operand.vmem [shape: f32[2,4,256], index: 5, kind: output, shape index: {}]  }
   0x1 LB: > { %s630_s19 = sadd.s32 4294967295, %s717_s18   ;;  %p634_p0 = scmp.ge.s32.totalorder %s717_s18, 1  ;;  %s717_s18 = sphi %s760_s18, %s15_s18  }
   0x2   : > { %p187_p1 = scmp.lt.s32.totalorder %s717_s18, 3 }
   0x4   : > { %p188_p2 = pnand %p634_p0, %p187_p1 }
   0x5   : > { %p215_p3 = scmp.lt.s32.totalorder (!%p188_p2), %s630_s19, 1  ;;  %s719_s24 = smov (!%p188_p2), 17   ;;  %vm233_vm0 = vcmask (!%p188_p2), 138240   ;;  %v727_v13 = vmov (!%p188_p2), 0.0   ;;  %v728_v14 = vmov (!%p188_p2), 0   ;;  %v398_v15 = vld [vmem:[%s883_s2] sm:$0xff] (!%p188_p2)  ;;  %v240_v17 = vlaneseq (!%p188_p2) }
   0x6   : > { %191 = sbr.rel (%p188_p2) target bundleno = 727 (0x2d7), region = 40  ;;  %s720_s25 = smov (!%p188_p2), 112   ;;  %478 = vmatprep.mubr.f32.mxu0 (!%p188_p2), %v727_v13  ;;  %562 = vmatprep.mubr.f32.mxu1 (!%p188_p2), %v727_v13  ;;  %vm281_vm5 = vcmask (!%p188_p2), 1031168   ;;  %vm320_vm6 = vcmask (!%p188_p2), 785408   ;;  %vm294_vm7 = vcmask (!%p188_p2), 916480   ;;  %vm307_vm8 = vcmask (!%p188_p2), 900096  }
   0x7   : > { %s721_s26 = smov (!%p188_p2), 126   ;;  %s722_s27 = smov (!%p188_p2), 110   ;;  %709 = vset.pattern.permute.xlu1 (!%p188_p2), %v728_v14  ;;  %710 = vset.pattern.permute.xlu0 (!%p188_p2), %v728_v14  ;;  %v241_v19 = vand.u32 (!%p188_p2), 127, %v240_v17  ;;  %vm366_vm9 = vcmask (!%p188_p2), 908288   ;;  %vm388_vm10 = vcmask (!%p188_p2), 1043456   ;;  %vm383_vm11 = vcmask (!%p188_p2), 777216  }
   0x8   : > { %s723_s28 = smov (!%p188_p2), 127   ;;  %s724_s29 = smov (!%p188_p2), 96   ;;  %vm349_vm12 = vcmask (!%p188_p2), 1039360   ;;  %vm333_vm13 = vcmask (!%p188_p2), 769024   ;;  %vm404_vm14 = vcmask (!%p188_p2), 293888   ;;  %vm494_vm15 = vcmask (!%p188_p2), 64512  }
   0x9   : > { %s725_s30 = smov (!%p188_p2), 111   ;;  %s726_s6 = smov (!%p188_p2), 95   ;;  %v242_v21 = vadd.s32 (!%p188_p2), 128, %v241_v19  ;;  %v247_v23 = vand.u32 (!%p188_p2), 15, %v241_v19  ;;  %v488_v35 = vld [vmem:[%s885_s4] sm:$0xf] (!%p188_p2) }
   0xa   : > { %s729_s7 = smov (!%p188_p2), 94  }
   0xb   : > { %v254_v25 = vand.u32 (!%p188_p2), 15, %v242_v21  ;;  %vm798_vm1 = vcmp.gt.s32.totalorder (!%p188_p2), %v247_v23, 0  ;;  %vm802_vm2 = vcmp.lt.s32.totalorder (!%p188_p2), %v247_v23, 15 }
   0xd   : > { %s896_s19 = smov (!%p215_p3, %s630_s19), 1  ;;  %vm806_vm3 = vcmp.gt.s32.totalorder %v254_v25, 0  ;;  %vm810_vm4 = vcmp.lt.s32.totalorder %v254_v25, 15 }
   0xe   : > { %s645_s20 = sshll.u32 %s896_s19, 3 }
   0xf   : > { %s219_s23 = scalar_lea.vmem %s881_s0, %s645_s20  ;;  %s224_s21 = scalar_lea.vmem %s886_s5, %s645_s20 }
  0x10   : > { %v776_v0 = vld [vmem:[%s219_s23] sm:$0xff] }
  0x11   : > { %v226_v1 = vmax.f32 %v776_v0, 0.0 }
  0x13   : > { %229 = vrot.lane.b32.xlu0 %v226_v1, %s719_s24  ;;  %v228_v2 = vcombine.high %v226_v1, %v226_v1 }
  0x17   : > { %231 = vrot.lane.b32.xlu0 %v228_v2, %s719_s24 }
  0x85   : > { %v230_v3 = vpop.permute.xlu0 %229 }
  0x86   : > { %v779_v4 = vsel %vm233_vm0, 0.0, %v230_v3 }
  0x87   : > { %288 = vrot.lane.b32.xlu1 %v779_v4, %s720_s25  ;;  %v340_v9 = vrot.slane %v779_v4, 4  ;;  %v271_v37 = vsel %vm798_vm1, %v779_v4, 0.0 }
  0x89   : > { %v232_v5 = vpop.permute.xlu0 %231 }
  0x8a   : > { %v782_v6 = vsel %vm233_vm0, %v230_v3, %v232_v5  ;;  %v239_v7 = vsel %vm233_vm0, %v232_v5, 0.0 }
  0x8b   : > { %275 = vrot.lane.b32.xlu1 %v779_v4, %s721_s26  ;;  %v679_v8 = vpack.i.bf16 %v239_v7, %v782_v6  ;;  %v341_v10 = vrot.slane %v782_v6, 4  ;;  %v342_v11 = vrot.slane %v239_v7, 4  ;;  %v272_v40 = vsel %vm806_vm3, %v782_v6, 0.0 }
  0x8d   : > { %680 = vrot.lane.b32.xlu0 %v679_v8, %s721_s26  ;;  %v699_v12 = vpack.i.bf16 %v342_v11, %v341_v10 }
  0x8f   : > { %301 = vrot.lane.b32.xlu1 %v779_v4, %s722_s27 }
  0x91   : > { %343 = vrot.lane.b32.xlu0 %v340_v9, %s723_s28 }
  0x93   : > { %314 = vrot.lane.b32.xlu1 %v779_v4, %s724_s29 }
  0x95   : > { %690 = vrot.lane.b32.xlu0 %v679_v8, %s724_s29 }
  0x97   : > { %675 = vrot.lane.b32.xlu1 %v679_v8, %s720_s25 }
  0x99   : > { %695 = vrot.lane.b32.xlu0 %v679_v8, %s725_s30 }
  0x9b   : > { %685 = vrot.lane.b32.xlu1 %v679_v8, %s722_s27 }
  0x9d   : > { %700 = vrot.lane.b32.xlu0 %v699_v12, %s723_s28 }
  0x9f   : > { %705 = vrot.lane.b32.xlu1 %v699_v12, %s726_s6 }
  0xa1   : > { %360 = vrot.lane.b32.xlu0 %v779_v4, %s725_s30 }
  0xa3   : > { %377 = vrot.lane.b32.xlu1 %v340_v9, %s726_s6 }
  0xa5   : > { %329 = vrot.lane.b32.xlu0 %v782_v6, %s729_s7 }
  0xa7   : > { %331 = vrot.lane.b32.xlu1 %v239_v7, %s729_s7 }
  0xa9   : > { %327 = vrot.lane.b32.xlu0 %v779_v4, %s729_s7 }
  0xab   : > { %401 = vperm.xlu1 %709, %v398_v15  }
  0xad   : > { %491 = vperm.xlu0 %710, %v488_v35  }
  0xf9   : > { %v289_v16 = vpop.permute.xlu1 %288 }
  0xfd   : > { %v276_v18 = vpop.permute.xlu1 %275 }
  0xff   : > { %v681_v20 = vpop.permute.xlu0 %680 }
 0x100   : > { %v683_v28 = vunpack.i.h.bf16 %v681_v20  ;;  %v682_v29 = vunpack.i.l.bf16 %v681_v20 }
 0x101   : > { %v302_v22 = vpop.permute.xlu1 %301 }
 0x102   : > { %v283_v42 = vsel %vm281_vm5, %v682_v29, %v683_v28  ;;  %v282_v46 = vsel %vm281_vm5, %v276_v18, %v682_v29 }
 0x103   : > { %v796_v24 = vpop.permute.xlu0 %343  ;;  %v287_v54 = vsel %vm810_vm4, %v283_v42, 0.0  ;;  %v286_v58 = vsel %vm802_vm2, %v282_v46, 0.0  ;;  %v487_v46 = vld [vmem:[%s884_s3] sm:$0xf] }
 0x105   : > { %v315_v26 = vpop.permute.xlu1 %314 }
 0x107   : > { %v691_v30 = vpop.permute.xlu0 %690 }
 0x108   : > { %v693_v33 = vunpack.i.h.bf16 %v691_v30  ;;  %v692_v34 = vunpack.i.l.bf16 %v691_v30 }
 0x109   : > { %v676_v36 = vpop.permute.xlu1 %675 }
 0x10a   : > { %v678_v38 = vunpack.i.h.bf16 %v676_v36  ;;  %v677_v39 = vunpack.i.l.bf16 %v676_v36  ;;  %v322_v43 = vsel %vm320_vm6, %v692_v34, %v693_v33  ;;  %v321_v56 = vsel %vm320_vm6, %v315_v26, %v692_v34 }
 0x10b   : > { %v696_v41 = vpop.permute.xlu0 %695  ;;  %v326_v60 = vsel %vm806_vm3, %v322_v43, 0.0  ;;  %v325_v25 = vsel %vm798_vm1, %v321_v56, 0.0 }
 0x10c   : > { %v295_v44 = vsel %vm294_vm7, %v289_v16, %v677_v39  ;;  %v296_v45 = vsel %vm294_vm7, %v677_v39, %v678_v38  ;;  %v698_v47 = vunpack.i.h.bf16 %v696_v41  ;;  %v697_v48 = vunpack.i.l.bf16 %v696_v41  ;;  %v397_v39 = vld [vmem:[%s882_s1] sm:$0xff] }
 0x10d   : > { %v686_v49 = vpop.permute.xlu1 %685  ;;  %v300_v50 = vsel %vm806_vm3, %v296_v45, 0.0  ;;  %v299_v51 = vsel %vm798_vm1, %v295_v44, 0.0 }
 0x10e   : > { %v688_v52 = vunpack.i.h.bf16 %v686_v49  ;;  %v687_v53 = vunpack.i.l.bf16 %v686_v49  ;;  %v357_v55 = vrot.slane %v300_v50, 4  ;;  %v356_v59 = vrot.slane %v299_v51, 4 }
 0x10f   : > { %v701_v57 = vpop.permute.xlu0 %700  ;;  %v368_v4 = vsel %vm366_vm9, %v697_v48, %v698_v47 }
 0x110   : > { %v308_v61 = vsel %vm307_vm8, %v302_v22, %v687_v53  ;;  %v309_v62 = vsel %vm307_vm8, %v687_v53, %v688_v52  ;;  %v703_v63 = vunpack.i.h.bf16 %v701_v57  ;;  %v702_v1 = vunpack.i.l.bf16 %v701_v57 }
 0x111   : > { %v706_v2 = vpop.permute.xlu1 %705  ;;  %v312_v3 = vsel %vm802_vm2, %v308_v61, 0.0  ;;  %v313_v5 = vsel %vm810_vm4, %v309_v62, 0.0  ;;  %v392_v6 = vsel %vm388_vm10, %v287_v54, %v357_v55  ;;  %v391_v10 = vsel %vm388_vm10, %v286_v58, %v356_v59 }
 0x112   : > { %v708_v7 = vunpack.i.h.bf16 %v706_v2  ;;  %v707_v8 = vunpack.i.l.bf16 %v706_v2  ;;  %v351_v9 = vsel %vm349_vm12, %v702_v1, %v703_v63  ;;  %v373_v11 = vrot.slane %v312_v3, 4 }
 0x113   : > { %v361_v12 = vpop.permute.xlu0 %360  ;;  %v374_v13 = vrot.slane %v313_v5, 4  ;;  %v390_v14 = vsel %vm388_vm10, %v272_v40, %v351_v9  ;;  %v350_v15 = vsel %vm349_vm12, %v796_v24, %v702_v1 }
 0x114   : > { %v367_v16 = vsel %vm366_vm9, %v361_v12, %v697_v48  ;;  %v385_v17 = vsel %vm383_vm11, %v707_v8, %v708_v7  ;;  %v647_v18 = vpack.c.bf16 %v392_v6, %v390_v14  ;;  %v389_v19 = vsel %vm388_vm10, %v271_v37, %v350_v15 }
 0x115   : > { %v378_v20 = vpop.permute.xlu1 %377  ;;  %v649_v21 = vpack.c.bf16 %v391_v10, %v389_v19  ;;  %v394_v22 = vsel %vm388_vm10, %v368_v4, %v374_v13  ;;  %v396_v23 = vsel %vm388_vm10, %v326_v60, %v385_v17  ;;  %v393_v28 = vsel %vm388_vm10, %v367_v16, %v373_v11 }
 0x116   : > { %v384_v26 = vsel %vm383_vm11, %v378_v20, %v707_v8  ;;  %648 = vmatprep.subr.bf16.mxu0 %v647_v18  ;;  %v651_v24 = vpack.c.bf16 %v396_v23, %v394_v22 }
 0x117   : > { %v395_v29 = vsel %vm388_vm10, %v325_v25, %v384_v26  ;;  %v330_v30 = vpop.permute.xlu0 %329  ;;  %650 = vmatpush1.bf16.msra.mxu0 %v649_v21 }
 0x118   : > { %652 = vmatprep.subr.bf16.mxu0 %v651_v24  ;;  %v653_v32 = vpack.c.bf16 %v395_v29, %v393_v28 }
 0x119   : > { %v332_v33 = vpop.permute.xlu1 %331 }
 0x11a   : > { %v335_v34 = vsel %vm333_vm13, %v330_v30, %v332_v33 }
 0x11b   : > { %v339_v36 = vsel %vm810_vm4, %v335_v34, 0.0  ;;  %v328_v27 = vpop.permute.xlu0 %327  ;;  %654 = vmatpush1.bf16.msra.mxu0 %v653_v32 }
 0x11c   : > { %v334_v37 = vsel %vm333_vm13, %v328_v27, %v330_v30  ;;  %639 = vmatprep.subr.msk.mxu0 %vm388_vm10, %v339_v36 }
 0x11d   : > { %v338_v38 = vsel %vm802_vm2, %v334_v37, 0.0 }
 0x11f   : > { %640 = vmatpush1.msk.msra.mxu0 %vm388_vm10, %v338_v38 }
 0x120   : > { %641 = vmatmul.mubr.msk.f32.vlgmr.msra.gmra.mrb[0].mxu0 %vm404_vm14, %v397_v39 }
 0x12a   : > { %v402_v40 = vpop.permute.xlu1 %401 }
 0x12c   : > { %v492_v47 = vpop.permute.xlu0 %491 }
 0x1f3   : > { %v480_v41 = vpop.f32.mrb[0].mxu0 }
 0x1f4   : > { %v481_v42 = vadd.f32 %v480_v41, %v402_v40  ;;  %v482_v43 = vpop.f32.mrb[1].mxu0 }
 0x1f5   : > { %v483_v31 = vadd.f32 %v482_v43, %v402_v40 }
 0x1f6   : > { %v485_v45 = vmax.f32 %v481_v42, 0.0 }
 0x1f7   : > { %v486_v44 = vmax.f32 %v483_v31, 0.0 }
 0x1f9   : > { %498 = vmatprep.subr.mxu1 %v486_v44 }
 0x1fa   : > { %499 = vmatpush1.msra.mxu1 %v485_v45 }
 0x1fb   : > { %642 = vmatmul.mubr.msk.f32.vlgmr.msra.gmra.mrb[0].mxu1 %vm494_vm15, %v487_v46 }
 0x2ce   : > { %v564_v48 = vpop.f32.mrb[0].mxu1 }
 0x2cf   : > { %v565_v49 = vadd.f32 %v564_v48, %v492_v47  ;;  %v566_v50 = vpop.f32.mrb[1].mxu1 }
 0x2d0   : > { %v567_v51 = vadd.f32 %v566_v50, %v492_v47 }
 0x2d2   : > { %v571_v52 = vcombine.low %v565_v49, %v567_v51 }
 0x2d4   : > { %v573_v53 = vadd.f32 %v571_v52, %v776_v0 }
 0x2d6   : > { %574 = vst [vmem:[%s224_s21] sm:$0xff] %v573_v53 }
 0x2d7 PF: > { %s15_s18 = sadd.s32 1, %s717_s18  }
 0x2d8   : > { %p12_p4 = scmp.ge.s32.totalorder %s15_s18, 4  }
 0x2da   :  { %14 = sbr.rel (!%p12_p4) target bundleno = 1 (0x1), region = 70 }

</bundles_post_ra>
